<compile_context>
chip_gen: v7x
topology: tpu7x:2x2x1
jax: 0.10.0
libtpu: 0.0.40
codegen_flags: <defaults>
</compile_context>

<pallas_src>
import functools

import jax
import jax.numpy as jnp
from jax import lax
from jax.experimental import pallas as pl
from jax.experimental.pallas import tpu as pltpu

ALPHA = 1.0
BETA = 1.0
NUM_CLASSES = 10
NEG_LOG_1E4 = 9.210340371976184  # -log(1e-4), folded out of the RCE product
_LANES = 128


def _round_up(x, m):
    return (x + m - 1) // m * m


def _sce_tile_kernel(pred_ref, labels_ref, out_ref, *, total_n):
    """One batch tile, reduced in-kernel to two per-tile partial sums.

    pred_ref:   (C, T) logits, batch on the lane axis.
    labels_ref: (1, T) int32 class indices.
    out_ref:    (2, 128) f32; row 0 = sum over the tile's valid samples of the
                per-sample CE, row 1 = sum of clipped softmax mass on non-true
                classes (caller multiplies by -log(1e-4) and divides by N).
    """
    logits = pred_ref[...].astype(jnp.float32)            # (C, T)
    labels = labels_ref[...]                               # (1, T) int32
    c, t = logits.shape

    # one-hot via sublane iota compare (no gather needed)
    cls = lax.broadcasted_iota(jnp.int32, (c, t), 0)
    onehot = cls == labels                                  # (C, T) bool

    # ---- shared softmax pieces (shift for stability, reuse everywhere) ----
    col_max = jnp.max(logits, axis=0, keepdims=True)        # (1, T)
    shifted = logits - col_max                               # (C, T)
    exps = jnp.exp(shifted)                                  # (C, T)  EUP
    denom = jnp.sum(exps, axis=0, keepdims=True)             # (1, T)

    # ---- cross entropy per sample (logsumexp - logit_true, on shifted) ----
    shifted_true = jnp.sum(jnp.where(onehot, shifted, 0.0), axis=0, keepdims=True)
    ce_cols = jnp.log(denom) - shifted_true                  # (1, T)

    # ---- reverse cross entropy partial: clipped non-true softmax mass ----
    inv_denom = pl.reciprocal(denom, approx=False)            # (1, T)
    probs = jnp.clip(exps * inv_denom, 1e-7, 1.0)              # (C, T)
    rce_cols = jnp.sum(jnp.where(onehot, 0.0, probs), axis=0, keepdims=True)

    # ---- mask the ragged tail (OOB columns of the last block are undefined;
    #      all ops above are per-column, so garbage never crosses columns) ----
    col = pl.program_id(0) * t + lax.broadcasted_iota(jnp.int32, (1, t), 1)
    valid = col < total_n
    ce_sum = jnp.sum(jnp.where(valid, ce_cols, 0.0))
    rce_sum = jnp.sum(jnp.where(valid, rce_cols, 0.0))

    # two direct row stores (no concat temp); value broadcast across lanes
    out_ref[0:1, :] = jnp.broadcast_to(ce_sum, (1, _LANES))
    out_ref[1:2, :] = jnp.broadcast_to(rce_sum, (1, _LANES))


def sce_loss(pred, pre_labels, labels, *, alpha=ALPHA, beta=BETA, tile_n=8192):
    """Pallas implementation of SCELoss.forward.

    pred:       (N, C) float (f32 or bf16) logits
    pre_labels: unused by the reference forward pass (kept for API parity)
    labels:     (N,) integer class indices in [0, C)
    returns:    scalar float32 loss
    """
    del pre_labels  # not used by the PyTorch forward()
    # TODO(synk): torch.nn.CrossEntropyLoss ignore_index=-100 default is not
    # handled; labels are assumed to be valid class indices.
    n, c = pred.shape

    # Tile sizing: multiple of 128; cap at 16K (v5e scoped-VMEM safety); keep
    # at least ~4 grid steps when N allows so v7x's two TCs both engage.
    tile_n = min(int(tile_n), 16384)
    tile_n = max(_LANES, min(_round_up(tile_n, _LANES),
                             _round_up(pl.cdiv(n, 4), _LANES)))
    num_tiles = pl.cdiv(n, tile_n)

    # Batch on the lane axis.  Single fused copy: no pad, no dtype cast.
    pred_t = jnp.transpose(pred)                     # (C, N)
    labels_2d = labels.astype(jnp.int32).reshape(1, n)

    kernel = functools.partial(_sce_tile_kernel, total_n=n)
    partials = pl.pallas_call(
        kernel,
        out_shape=jax.ShapeDtypeStruct((2, num_tiles * _LANES), jnp.float32),
        grid=(num_tiles,),
        in_specs=[
            pl.BlockSpec((c, tile_n), lambda i: (0, i)),   # logits tile
            pl.BlockSpec((1, tile_n), lambda i: (0, i)),   # labels tile
        ],
        out_specs=pl.BlockSpec((2, _LANES), lambda i: (0, i)),
        compiler_params=pltpu.CompilerParams(
            dimension_semantics=("parallel",)),            # shards across TCs on v7x
    )(pred_t, labels_2d)

    # Tiny epilogue: pick lane 0 of each per-tile block, one combined reduce.
    sums = jnp.sum(partials.reshape(2, num_tiles, _LANES)[:, :, 0], axis=1)
    inv_n = 1.0 / n
    return alpha * sums[0] * inv_n + beta * NEG_LOG_1E4 * sums[1] * inv_n


def _sce_loss_ref(pred, labels, alpha=ALPHA, beta=BETA, num_classes=NUM_CLASSES):
    """Pure-JAX reference mirroring the PyTorch module."""
    n, _ = pred.shape
    lse = jax.nn.logsumexp(pred, axis=1)
    ce = jnp.mean(lse - pred[jnp.arange(n), labels])
    probs = jnp.clip(jax.nn.softmax(pred, axis=1), 1e-7, 1.0)
    onehot = jnp.clip(jax.nn.one_hot(labels, num_classes), 1e-4, 1.0)
    rce = jnp.mean(-jnp.sum(probs * jnp.log(onehot), axis=1))
    return beta * rce + alpha * ce


if __name__ == "__main__":
    key = jax.random.PRNGKey(0)
    k1, k2 = jax.random.split(key)

    # N=300 is not a multiple of 128: exercises a 3-step grid, the ragged
    # (un-padded) last block, and the in-kernel tail mask.
    N = 300
    pred = jax.random.normal(k1, (N, NUM_CLASSES), dtype=jnp.float32)
    labels = jax.random.randint(k2, (N,), 0, NUM_CLASSES, dtype=jnp.int32)
    pre_labels = labels  # unused by forward(), passed for API parity

    loss = sce_loss(pred, pre_labels, labels)
    loss = jax.block_until_ready(loss)

    ref = _sce_loss_ref(pred, labels)
    assert jnp.allclose(loss, ref, rtol=1e-4, atol=1e-4), (loss, ref)

    print("KERNEL_OK")
</pallas_src>

<mosaic_0001>
module attributes {stable_mosaic.version = 11 : i64} {
  func.func @_sce_tile_kernel(%arg0: i32, %arg1: memref<10x128xf32, #tpu.memory_space<vmem>>, %arg2: memref<1x128xi32, #tpu.memory_space<vmem>>, %arg3: memref<2x128xf32, #tpu.memory_space<vmem>>) attributes {dimension_semantics = [#tpu.dimension_semantics<parallel>], iteration_bounds = array<i64: 3>, scalar_prefetch = 0 : i64, scratch_operands = 0 : i64, tpu.core_type = #tpu.core_type<tc>, window_params = [{transform_indices = @transform_0, window_bounds = array<i64: 10, 128>}, {transform_indices = @transform_1, window_bounds = array<i64: 1, 128>}, {transform_indices = @transform_2, window_bounds = array<i64: 2, 128>}]} {
    %c0 = arith.constant 0 : index
    %c0_0 = arith.constant 0 : index
    %0 = vector.load %arg1[%c0, %c0_0] : memref<10x128xf32, #tpu.memory_space<vmem>>, vector<10x128xf32>
    %c0_1 = arith.constant 0 : index
    %c0_2 = arith.constant 0 : index
    %1 = vector.load %arg2[%c0_1, %c0_2] : memref<1x128xi32, #tpu.memory_space<vmem>>, vector<1x128xi32>
    %2 = tpu.iota {dimensions = array<i32: 0>} : vector<10x128xi32>
    %3 = vector.broadcast %1 : vector<1x128xi32> to vector<10x128xi32>
    %4 = arith.cmpi eq, %2, %3 : vector<10x128xi32>
    %cst = arith.constant dense<0xFF800000> : vector<128xf32>
    %5 = vector.multi_reduction <maximumf>, %0, %cst [0] : vector<10x128xf32> to vector<128xf32>
    %6 = vector.shape_cast %5 : vector<128xf32> to vector<1x128xf32>
    %7 = vector.broadcast %6 : vector<1x128xf32> to vector<10x128xf32>
    %8 = arith.subf %0, %7 : vector<10x128xf32>
    %9 = math.exp %8 : vector<10x128xf32>
    %cst_3 = arith.constant dense<0.000000e+00> : vector<128xf32>
    %10 = vector.multi_reduction <add>, %9, %cst_3 [0] : vector<10x128xf32> to vector<128xf32>
    %11 = vector.shape_cast %10 : vector<128xf32> to vector<1x128xf32>
    %cst_4 = arith.constant 0.000000e+00 : f32
    %12 = vector.broadcast %cst_4 : f32 to vector<10x128xf32>
    %13 = arith.select %4, %8, %12 : vector<10x128xi1>, vector<10x128xf32>
    %cst_5 = arith.constant dense<0.000000e+00> : vector<128xf32>
    %14 = vector.multi_reduction <add>, %13, %cst_5 [0] : vector<10x128xf32> to vector<128xf32>
    %15 = vector.shape_cast %14 : vector<128xf32> to vector<1x128xf32>
    %16 = math.log %11 : vector<1x128xf32>
    %17 = arith.subf %16, %15 : vector<1x128xf32>
    %18 = tpu.reciprocal %11 : vector<1x128xf32> -> vector<1x128xf32>
    %19 = vector.broadcast %18 : vector<1x128xf32> to vector<10x128xf32>
    %20 = arith.mulf %9, %19 : vector<10x128xf32>
    %cst_6 = arith.constant 1.000000e-07 : f32
    %cst_7 = arith.constant 1.000000e+00 : f32
    %21 = vector.broadcast %cst_6 : f32 to vector<10x128xf32>
    %22 = arith.maximumf %21, %20 : vector<10x128xf32>
    %23 = vector.broadcast %cst_7 : f32 to vector<10x128xf32>
    %24 = arith.minimumf %23, %22 : vector<10x128xf32>
    %cst_8 = arith.constant 0.000000e+00 : f32
    %25 = vector.broadcast %cst_8 : f32 to vector<10x128xf32>
    %26 = arith.select %4, %25, %24 : vector<10x128xi1>, vector<10x128xf32>
    %cst_9 = arith.constant dense<0.000000e+00> : vector<128xf32>
    %27 = vector.multi_reduction <add>, %26, %cst_9 [0] : vector<10x128xf32> to vector<128xf32>
    %28 = vector.shape_cast %27 : vector<128xf32> to vector<1x128xf32>
    %c128_i32 = arith.constant 128 : i32
    %29 = arith.muli %arg0, %c128_i32 : i32
    %30 = tpu.iota {dimensions = array<i32: 1>} : vector<1x128xi32>
    %31 = vector.broadcast %29 : i32 to vector<1x128xi32>
    %32 = arith.addi %31, %30 : vector<1x128xi32>
    %c300_i32 = arith.constant 300 : i32
    %33 = vector.broadcast %c300_i32 : i32 to vector<1x128xi32>
    %34 = arith.cmpi slt, %32, %33 : vector<1x128xi32>
    %cst_10 = arith.constant 0.000000e+00 : f32
    %35 = vector.broadcast %cst_10 : f32 to vector<1x128xf32>
    %36 = arith.select %34, %17, %35 : vector<1x128xi1>, vector<1x128xf32>
    %37 = vector.shape_cast %36 : vector<1x128xf32> to vector<1x1x128xf32>
    %cst_11 = arith.constant dense<0.000000e+00> : vector<1xf32>
    %38 = vector.multi_reduction <add>, %37, %cst_11 [1, 2] : vector<1x1x128xf32> to vector<1xf32>
    %39 = vector.shape_cast %38 : vector<1xf32> to vector<1x1x1xf32>
    %40 = vector.extract %39[0, 0, 0] : f32 from vector<1x1x1xf32>
    %cst_12 = arith.constant 0.000000e+00 : f32
    %41 = vector.broadcast %cst_12 : f32 to vector<1x128xf32>
    %42 = arith.select %34, %28, %41 : vector<1x128xi1>, vector<1x128xf32>
    %43 = vector.shape_cast %42 : vector<1x128xf32> to vector<1x1x128xf32>
    %cst_13 = arith.constant dense<0.000000e+00> : vector<1xf32>
    %44 = vector.multi_reduction <add>, %43, %cst_13 [1, 2] : vector<1x1x128xf32> to vector<1xf32>
    %45 = vector.shape_cast %44 : vector<1xf32> to vector<1x1x1xf32>
    %46 = vector.extract %45[0, 0, 0] : f32 from vector<1x1x1xf32>
    %47 = vector.broadcast %40 : f32 to vector<1x128xf32>
    %c0_14 = arith.constant 0 : index
    %c0_15 = arith.constant 0 : index
    %48 = vector.load %arg3[%c0_14, %c0_15] : memref<2x128xf32, #tpu.memory_space<vmem>>, vector<1x128xf32>
    tpu.vector_store %arg3[%c0_14, %c0_15], %47 {strides = array<i32>} : memref<2x128xf32, #tpu.memory_space<vmem>>, vector<1x128xf32>,
    %49 = vector.broadcast %46 : f32 to vector<1x128xf32>
    %c1 = arith.constant 1 : index
    %c0_16 = arith.constant 0 : index
    %50 = vector.load %arg3[%c1, %c0_16] : memref<2x128xf32, #tpu.memory_space<vmem>>, vector<1x128xf32>
    tpu.vector_store %arg3[%c1, %c0_16], %49 {strides = array<i32>} : memref<2x128xf32, #tpu.memory_space<vmem>>, vector<1x128xf32>,
    return
  }
  func.func @transform_0(%arg0: i32) -> (i32, i32) {
    %c0_i32 = arith.constant 0 : i32
    %c0_i32_0 = arith.constant 0 : i32
    return %c0_i32, %arg0 : i32, i32
  }
  func.func @transform_1(%arg0: i32) -> (i32, i32) {
    %c0_i32 = arith.constant 0 : i32
    %c0_i32_0 = arith.constant 0 : i32
    return %c0_i32, %arg0 : i32, i32
  }
  func.func @transform_2(%arg0: i32) -> (i32, i32) {
    %c0_i32 = arith.constant 0 : i32
    %c0_i32_0 = arith.constant 0 : i32
    return %c0_i32, %arg0 : i32, i32
  }
}

</mosaic_0001>

<bundles_post_ra>
// kernel: tpu_custom_call.1
= control target key start
LH: loop header
LB: loop body
LE: loop exit
PB: predicated region body
PF: predicated region fallthrough
CT: control target
= control target key end

     0   :  { %7 = vsyncpa [#allocation3], 0  ;;  %s738_s0 = inlined_call_operand.hbm [shape: f32[10,300], index: 0, kind: input, shape index: {}]   ;;  %s739_s1 = inlined_call_operand.vmem [shape: s32[1,300], index: 1, kind: input, shape index: {}]   ;;  %s740_s2 = inlined_call_operand.hbm [shape: f32[2,384], index: 2, kind: output, shape index: {}]  }
   0x1   :  { %9 = vsyncpa [#allocation3 + $0x1], 0 }
   0x2   :  { %10 = vsyncpa [#allocation4], 0 }
   0x3   :  { %12 = vsyncpa [#allocation4 + $0x1], 0  ;;  %s559_s9 = smov 0   ;;  %s561_s10 = smov 0  }
   0x4   :  { %s563_s11 = smov 0   ;;  %s565_s12 = smov 0  }
   0x5 LB: > { %s580_s13 = sadd.s32 4294967295, %s537_s12   ;;  %s366_s14 = sadd.s32 4294967294, %s537_s12   ;;  %s537_s12 = sphi %s565_s12, %s753_s12   ;;  %s533_s11 = sphi %s563_s11, %s752_s11   ;;  %s529_s10 = sphi %s561_s10, %s751_s10   ;;  %s525_s9 = sphi %s559_s9, %s750_s9  }
   0x6   : > { %s584_s15 = sadd.s32 1, %s537_s12   ;;  %s25_s16 = sadd.s32 1, %s533_s11 }
   0x7   : > { %s22_s17 = ssub.s32 %s537_s12, %s584_s15  ;;  %p32_p0 = scmp.ne.s32.totalorder %s533_s11, %s529_s10 }
   0x8   : > { %p23_p1 = scmp.eq.s32.totalorder %s22_s17, 0  ;;  %p33_p2 = scmp.eq.s32.totalorder %s537_s12, 0 }
   0x9   : > { %p38_p3 = scmp.ne.s32.totalorder %s529_s10, %s525_s9  ;;  %p39_p4 = scmp.eq.s32.totalorder %s580_s13, 0 }
   0xa   : > { %s596_s18 = scalar_select %p23_p1, %s533_s11, %s25_s16  }
   0xb   : > { %p598_p5 = por %p33_p2, %p32_p0  ;;  %p602_p6 = por %p39_p4, %p38_p3 }
   0xc   : > { %p88_p7 = scmp.eq.s32.totalorder %s580_s13, 2  ;;  %p94_p8 = scmp.eq.s32.totalorder %s366_s14, 2 }
   0xd   : > { %p396_p9 = scmp.lt.s32.totalorder %s537_s12, 3  ;;  %s114_s23 = sand.u32 1, %s533_s11  }
   0xe   : > { %p608_p10 = por %p88_p7, %p32_p0  ;;  %p612_p11 = por %p94_p8, %p38_p3 }
   0xf   : > { %s370_s24 = sshll.u32 %s537_s12, 7  ;;  %s369_s25 = sshll.u32 %s114_s23, 4 }
  0x10   : > { %s744_s21 = scalar_select %p608_p10, 1, 0 }
  0x11   : > { %s745_s22 = scalar_select %p612_p11, 1, 0 }
  0x12   : > { %s621_s28 = scalar_lea.hbm %s738_s0, %s370_s24  ;;  %s118_s29 = scalar_lea.vmem [#allocation2], %s369_s25 }
  0x13   : > { %s124_s30 = sshll.u32 %s118_s29, 4  ;;  %p625_p12 = pnand %p396_p9, %p598_p5  ;;  %s629_s30 = int_to_ptr.vmem [resolvable:$true] %s124_s30 }
  0x14   : > { %s632_s4 = scalar_lea.sflag [#allocation3], %s114_s23  ;;  %s441_s5 = scalar_lea.hbm %s621_s28, 256 }
  0x15   : > { %p442_p0 = scmp.ne.s32.totalorder %s621_s28, %s441_s5  ;;  %p443_p1 = pneg %p625_p12 }
  0x16   : > { %s446_s8 = scalar_lea.hbm %s738_s0, 768  ;;  %p447_p4 = scmp.lt.u32.totalorder %s621_s28, %s738_s0 }
  0x17   : > { %p444_p2 = pnand %p443_p1, %p442_p0  ;;  %p448_p5 = scmp.lt.u32.totalorder %s446_s8, %s441_s5 }
  0x18   : > { %p450_p8 = scmp.lt.u32.totalorder %s441_s5, %s621_s28 }
  0x19   : > { %p445_p3 = pneg %p444_p2  ;;  %p449_p7 = por %p448_p5, %p447_p4 }
  0x1b   : > { %p451_p9 = por %p450_p8, %p449_p7 }
  0x1d   : > { %p452_p13 = pnand %p451_p9, %p445_p3 }
  0x1f   : > { %455 = shalt.err (!%p452_p13)
}
  0x20   : > { %s456_s17 = scalar_lea.vmem %s629_s30, 256  ;;  %s539_s19 = smov [#allocation2]  }
  0x21   : > { %p457_p0 = scmp.ne.s32.totalorder %s629_s30, %s456_s17  ;;  %s461_s23 = sshll.u32 %s539_s19, 4  ;;  %s462_s23 = int_to_ptr.vmem [resolvable:$false] %s461_s23 }
  0x22   : > { %s463_s24 = scalar_lea.vmem %s462_s23, 512  ;;  %p464_p10 = scmp.lt.s32.totalorder %s629_s30, %s462_s23 }
  0x23   : > { %p459_p2 = pnand %p457_p0, %p443_p1  ;;  %p465_p4 = scmp.lt.s32.totalorder %s463_s24, %s456_s17 }
  0x25   : > { %p460_p11 = pneg %p459_p2  ;;  %p466_p5 = por %p465_p4, %p464_p10 }
  0x27   : > { %p467_p7 = pnand %p466_p5, %p460_p11 }
  0x29   : > { %470 = shalt.err (!%p467_p7)
}
  0x2a   : > { %s540_s25 = smov 384   ;;  %s541_s26 = smov 128  }
  0x2b   : > { %s542_s27 = smov 8   ;;  %p138_p13 = scmp.lt.s32.totalorder %s537_s12, 4 }
  0x2c   : > { %391 = dma.hbm_to_vmem [thread:$0]  (!%p625_p12), %s621_s28, 256, %s629_s30, %s632_s4, %s540_s25, %s541_s26, %s542_s27  }
  0x2d   : > { %p747_p1 = scmp.ge.s32.totalorder %s537_s12, 1 }
  0x2f   : > { %p139_p3 = pnand %p747_p1, %p138_p13 }
  0x30   : > { %s664_s29 = sand.u32 (!%p139_p3), 1, %s529_s10  }
  0x31   : > { %142 = sbr.rel (%p139_p3) target bundleno = 359 (0x167), region = 28  ;;  %s372_s5 = sshll.u32 (!%p139_p3), %s664_s29, 4 }
  0x32   : > { %s145_s6 = scalar_lea.sflag (!%p139_p3), [#allocation3], %s664_s29  ;;  %s148_s7 = scalar_lea.vmem (!%p139_p3), [#allocation2], %s372_s5 }
  0x38   : > { %516 = dma.done.wait (%p602_p6), %s145_s6, 256  }
  0x39   : > { %518 = vsyncadd (%p602_p6), %s145_s6, 4294967040  ;;  %vm187_vm0 = vcmask 1041408   ;;  %v175_v0 = vld [vmem:[%s148_s7] sm:$0xff]  ;;  %v176_v1 = vld [vmem:[%s148_s7 + $0x8] sm:$0x3]  ;;  %p172_p10 = scmp.lt.s32.totalorder %s580_s13, 2  ;;  %v178_v8 = vlaneseq }
  0x3a   : > { %v188_v2 = vsel %vm187_vm0, %v176_v1, -inf  ;;  %s375_s4 = sshll.u32 %s580_s13, 7  ;;  %vm247_vm4 = vcmask 1040384   ;;  %s373_s8 = sshll.u32 %s664_s29, 1 }
  0x3b   : > { %v189_v3 = vmax.f32 %v175_v0, %v188_v2  ;;  %s173_s28 = scalar_select %p172_p10, %s580_s13, 2  ;;  %v179_v11 = vshrl.u32 %v178_v8, 7  ;;  %v242_v36 = vand.u32 127, %v178_v8  ;;  %v243_v38 = vstv %s375_s4 }
  0x3c   : > { %s171_s16 = scalar_lea.vmem [#allocation5], %s373_s8  ;;  %s377_s19 = sshll.u32 %s580_s13, 5 }
  0x3d   : > { %v190_v4 = vrot.slane %v189_v3, 4  ;;  %s174_s3 = scalar_lea.vmem %s739_s1, %s173_s28  ;;  %v180_v16 = vadd.s32 8, %v179_v11  ;;  %v244_v39 = vadd.s32 %v243_v38, %v242_v36  ;;  %s287_s17 = sshll.u32 %s171_s16, 4  ;;  %s692_s17 = int_to_ptr.vmem [resolvable:$true] %s287_s17 }
  0x3e   : > { %v374_v17 = vld [vmem:[%s174_s3] ss:$0 sm:$0xff]  ;;  %s697_s26 = scalar_lea.hbm %s740_s2, %s377_s19  ;;  %s274_s27 = scalar_lea.sflag [#allocation4], %s664_s29 }
  0x3f   : > { %v191_v5 = vmax.f32 %v189_v3, %v190_v4  ;;  %vm186_vm1 = vcmp.eq.s32.totalorder %v180_v16, %v374_v17  ;;  %vm185_vm2 = vcmp.eq.s32.totalorder %v179_v11, %v374_v17  ;;  %vm245_vm3 = vcmp.lt.s32.totalorder %v244_v39, 300  ;;  %s471_s5 = scalar_lea.vmem %s692_s17, 32  ;;  %p748_p11 = scmp.ne.s32.totalorder %s744_s21, 0 }
  0x40   : > { %p472_p6 = scmp.ne.s32.totalorder %s692_s17, %s471_s5  ;;  %s543_s13 = smov [#allocation5]  }
  0x41   : > { %v192_v6 = vrot.slane %v191_v5, 2  ;;  %s475_s6 = sshll.u32 %s543_s13, 4  ;;  %s476_s6 = int_to_ptr.vmem [resolvable:$false] %s475_s6 }
  0x42   : > { %p473_p12 = pnand %p472_p6, %p748_p11  ;;  %s477_s7 = scalar_lea.vmem %s476_s6, 64 }
  0x43   : > { %v193_v7 = vmax.f32 %v191_v5, %v192_v6  ;;  %p478_p9 = scmp.lt.s32.totalorder %s692_s17, %s476_s6  ;;  %p479_p0 = scmp.lt.s32.totalorder %s477_s7, %s471_s5 }
  0x44   : > { %p474_p8 = pneg %p473_p12 }
  0x45   : > { %v194_v9 = vrot.slane %v193_v7, 1  ;;  %p480_p2 = por %p479_p0, %p478_p9 }
  0x47   : > { %v195_v10 = vmax.f32 %v193_v7, %v194_v9  ;;  %p481_p4 = pnand %p480_p2, %p474_p8 }
  0x49   : > { %v196_v12 = vsub.f32 %v175_v0, %v195_v10  ;;  %v197_v13 = vsub.f32 %v176_v1, %v195_v10 }
  0x4b   : > { %v198_v14 = vmul.f32 1.442695, %v196_v12  ;;  %v200_v15 = vmul.f32 1.442695, %v197_v13  ;;  %v211_v18 = vsel %vm186_vm1, %v197_v13, 0.0  ;;  %v210_v19 = vsel %vm185_vm2, %v196_v12, 0.0 }
  0x4c   : > { %v212_v20 = vsel %vm187_vm0, %v211_v18, 0.0 }
  0x4d   : > { %433 = vpow2.f32 %v198_v14  ;;  %v213_v24 = vadd.f32 %v212_v20, %v210_v19 }
  0x4e   : > { %435 = vpow2.f32 %v200_v15 }
  0x4f   : > { %v214_v27 = vrot.slane %v213_v24, 4 }
  0x51   : > { %v215_v30 = vadd.f32 %v214_v27, %v213_v24 }
  0x53   : > { %v216_v33 = vrot.slane %v215_v30, 2 }
  0x55   : > { %v217_v35 = vadd.f32 %v216_v33, %v215_v30 }
  0x57   : > { %v434_v21 = vpop.eup %433  ;;  %v218_v37 = vrot.slane %v217_v35, 1 }
  0x58   : > { %v436_v22 = vpop.eup %435 }
  0x59   : > { %v202_v23 = vsel %vm187_vm0, %v436_v22, 0.0  ;;  %v219_v40 = vadd.f32 %v218_v37, %v217_v35 }
  0x5a   : > { %v203_v25 = vadd.f32 %v434_v21, %v202_v23 }
  0x5c   : > { %v204_v26 = vrot.slane %v203_v25, 4 }
  0x5e   : > { %v205_v28 = vadd.f32 %v204_v26, %v203_v25 }
  0x60   : > { %v206_v29 = vrot.slane %v205_v28, 2 }
  0x62   : > { %v207_v31 = vadd.f32 %v206_v29, %v205_v28 }
  0x64   : > { %v208_v32 = vrot.slane %v207_v31, 1 }
  0x66   : > { %v209_v34 = vadd.f32 %v208_v32, %v207_v31 }
  0x68   : > { %437 = vlog2.f32 %v209_v34 }
  0x69   : > { %439 = vrcp.f32 %v209_v34 }
  0x72   : > { %v438_v41 = vpop.eup %437 }
  0x73   : > { %v440_v42 = vpop.eup %439  ;;  %v221_v43 = vmul.f32 0.6931472, %v438_v41 }
  0x74   : > { %v224_v44 = vmul.f32 %v440_v42, %v434_v21  ;;  %v225_v45 = vmul.f32 %v440_v42, %v436_v22 }
  0x75   : > { %v222_v46 = vsub.f32 %v221_v43, %v219_v40 }
  0x76   : > { %v226_v47 = vmax.f32 %v224_v44, 1e-07  ;;  %v227_v48 = vmax.f32 %v225_v45, 1e-07 }
  0x77   : > { %v246_v49 = vsel %vm245_vm3, %v222_v46, 0.0 }
  0x78   : > { %v248_v50 = vsel %vm247_vm4, %v246_v49, 0.0  ;;  %v228_v51 = vmin.f32 %v226_v47, 1.0  ;;  %v229_v52 = vmin.f32 %v227_v48, 1.0 }
  0x79   : > { %249 = vadd.xlane.f32.xlu0 %v248_v50 }
  0x7a   : > { %v230_v53 = vsel %vm185_vm2, 0.0, %v228_v51  ;;  %v231_v54 = vsel %vm186_vm1, 0.0, %v229_v52 }
  0x7b   : > { %v232_v55 = vsel %vm187_vm0, %v231_v54, 0.0 }
  0x7c   : > { %v233_v56 = vadd.f32 %v232_v55, %v230_v53 }
  0x7e   : > { %v234_v57 = vrot.slane %v233_v56, 4 }
  0x80   : > { %v235_v58 = vadd.f32 %v234_v57, %v233_v56 }
  0x82   : > { %v236_v59 = vrot.slane %v235_v58, 2 }
  0x84   : > { %v237_v60 = vadd.f32 %v236_v59, %v235_v58 }
  0x86   : > { %v238_v61 = vrot.slane %v237_v60, 1 }
  0x88   : > { %v239_v62 = vadd.f32 %v238_v61, %v237_v60 }
  0x8a   : > { %v258_v63 = vsel %vm245_vm3, %v239_v62, 0.0 }
  0x8b   : > { %v259_v0 = vsel %vm247_vm4, %v258_v63, 0.0 }
  0x8c   : > { %260 = vadd.xlane.f32.xlu0 %v259_v0 }
 0x106   : > { %v250_v1 = vpop.xlane.xlu0 %249 }
 0x107   : > { %v251_v2 = vrot.slane %v250_v1, 4 }
 0x109   : > { %v252_v3 = vadd.f32 %v251_v2, %v250_v1 }
 0x10b   : > { %v253_v4 = vrot.slane %v252_v3, 2 }
 0x10d   : > { %v254_v5 = vadd.f32 %v253_v4, %v252_v3 }
 0x10f   : > { %v255_v6 = vrot.slane %v254_v5, 1 }
 0x111   : > { %v256_v7 = vadd.f32 %v255_v6, %v254_v5 }
 0x113   : > { %380 = vpush %v256_v7 }
 0x119   : > { %v261_v8 = vpop.xlane.xlu0 %260 }
 0x11a   : > { %v262_v9 = vrot.slane %v261_v8, 4 }
 0x11c   : > { %v263_v10 = vadd.f32 %v262_v9, %v261_v8 }
 0x11e   : > { %v264_v11 = vrot.slane %v263_v10, 2 }
 0x120   : > { %v265_v12 = vadd.f32 %v264_v11, %v263_v10 }
 0x122   : > { %v266_v13 = vrot.slane %v265_v12, 1 }
 0x124   : > { %v267_v14 = vadd.f32 %v266_v13, %v265_v12 }
 0x126   : > { %382 = vpush %v267_v14 }
 0x144   : > { %s381_s14 = spop %380 }
 0x145   : > { %v269_v15 = vstv %s381_s14 }
 0x146   : > { %270 = vst [vmem:[%s171_s16] sm:$0x1] %v269_v15 }
 0x157   : > { %s383_s23 = spop %382 }
 0x158   : > { %v271_v16 = vstv %s383_s23 }
 0x159   : > { %272 = vst [vmem:[%s171_s16 + $0x1] sm:$0x1] %v271_v16 }
 0x15a   : > { %484 = shalt.err (!%p481_p4)
}
 0x15b   : > { %s485_s29 = scalar_lea.hbm %s697_s26, 32  ;;  %s489_s30 = scalar_lea.hbm %s740_s2, 96 }
 0x15c   : > { %p486_p5 = scmp.ne.s32.totalorder %s697_s26, %s485_s29  ;;  %p490_p1 = scmp.lt.u32.totalorder %s697_s26, %s740_s2 }
 0x15d   : > { %p491_p3 = scmp.lt.u32.totalorder %s489_s30, %s485_s29  ;;  %p493_p6 = scmp.lt.u32.totalorder %s485_s29, %s697_s26 }
 0x15e   : > { %p487_p7 = pnand %p486_p5, %p748_p11 }
 0x15f   : > { %p492_p10 = por %p491_p3, %p490_p1 }
 0x160   : > { %p488_p13 = pneg %p487_p7 }
 0x161   : > { %p494_p12 = por %p493_p6, %p492_p10 }
 0x163   : > { %p495_p8 = pnand %p494_p12, %p488_p13 }
 0x165   : > { %498 = shalt.err (!%p495_p8)
}
 0x166   : > { %386 = dma.vmem_to_hbm [thread:$0]  (%p748_p11), %s692_s17, 32, %s697_s26, %s274_s27  }
 0x167 PF: > { %p397_p9 = scmp.ge.s32.totalorder %s537_s12, 2  ;;  %s299_s8 = sand.u32 1, %s525_s9  }
 0x168   : > { %p749_p0 = scmp.ne.s32.totalorder %s745_s22, 0  ;;  %s300_s14 = scalar_lea.sflag [#allocation4], %s299_s8 }
 0x16a   : > { %p393_p2 = pnand %p397_p9, %p749_p0 }
 0x16c   : > { %520 = dma.done.wait (!%p393_p2), %s300_s14, 32  }
 0x16d   : > { %522 = vsyncadd (!%p393_p2), %s300_s14, 4294967264  ;;  %p15_p4 = scmp.ge.s32.totalorder %s584_s15, 5   ;;  %s750_s9 = smov %s529_s10 }
 0x16e   : > { %s751_s10 = smov %s533_s11  ;;  %s752_s11 = smov %s596_s18 }
 0x16f   : > { %s753_s12 = smov %s584_s15  ;;  %17 = sbr.rel (!%p15_p4) target bundleno = 5 (0x5), region = 76 }
 0x176   :  { %305 = vsyncpa [#allocation3], 1 }
 0x177   :  { %307 = vsyncpa [#allocation3 + $0x1], 1 }
 0x178   :  { %308 = vsyncpa [#allocation4], 1 }
 0x179   :  { %310 = vsyncpa [#allocation4 + $0x1], 1 }

</bundles_post_ra>
